<compile_context>
chip_gen: v6e
topology: v6e:2x2x1
jax: 0.10.0
libtpu: 0.0.40
codegen_flags: <defaults>
</compile_context>

<pallas_src>
import functools

import jax
import jax.numpy as jnp
from jax.experimental import pallas as pl
from jax.experimental.pallas import tpu as pltpu


def _round_up(x, m):
    return ((x + m - 1) // m) * m


def _metapath_average_block_kernel(idx_ref, feat_ref, out_ref, *,
                                   num_heads, out_dim, node_block):
    # idx_ref : VMEM (Eb, L)     int32  metapath node indices for this edge block
    # feat_ref: VMEM (N_pad, d)         resident node-feature table (d = H*D)
    # out_ref : VMEM (Eb, d)            normalized output block
    eb, seq_len = idx_ref.shape
    n_nodes_pad, d = feat_ref.shape
    n_blocks = n_nodes_pad // node_block

    idx = idx_ref[...]                                        # (Eb, L) int32
    lane_iota = jax.lax.broadcasted_iota(jnp.int32, (eb, node_block), 1)

    # Gather-as-matmul, K-tiled over node blocks:
    #   counts[e, n] = #{ l < L-1 : idx[e, l] == base + n }
    #   acc         += counts @ features[base : base + node_block]
    # counts are small exact integers; they are cast once to the table dtype
    # (exact in bf16 for L <= 257) so bf16 tables hit the MXU at full
    # throughput while accumulation stays in f32 via preferred_element_type.
    def accumulate(acc, block_idx, row_start):
        base = block_idx * node_block
        node_ids = lane_iota + base
        counts = jnp.zeros((eb, node_block), jnp.float32)
        for l in range(seq_len - 1):                          # last position excluded
            counts = counts + (idx[:, l:l + 1] == node_ids).astype(jnp.float32)
        feat_blk = feat_ref[pl.ds(row_start, node_block), :]
        return acc + jnp.dot(counts.astype(feat_blk.dtype), feat_blk,
                             preferred_element_type=jnp.float32)

    acc = jnp.zeros((eb, d), jnp.float32)
    if n_blocks <= 8:
        # Short trip count: static unroll with fully static row offsets.
        for b in range(n_blocks):
            acc = accumulate(acc, b, b * node_block)
    else:
        def body(b, a):
            return accumulate(a, b, pl.multiple_of(b * node_block, node_block))
        acc = jax.lax.fori_loop(0, n_blocks, body, acc)

    mean = acc * jnp.float32(1.0 / (seq_len - 1))             # (Eb, d)

    # F.normalize(hidden.view(-1, H, D), p=2, dim=1): L2 norm over the heads
    # axis of the flattened (Eb, H*D) layout. Unrolled per-head slice
    # square-and-add + one sqrt; broadcast back with a lane-wise concatenate.
    sq = mean * mean
    ssum = sq[:, 0:out_dim]
    for h in range(1, num_heads):
        ssum = ssum + sq[:, h * out_dim:(h + 1) * out_dim]
    inv_norm = 1.0 / jnp.maximum(jnp.sqrt(ssum), jnp.float32(1e-12))   # (Eb, D)
    inv_full = jnp.concatenate([inv_norm] * num_heads, axis=1)         # (Eb, d)

    # TODO(synk): when d < 128 and the store slot binds, repack 128//d edges
    # per output row (lane-dense slab) before this store.
    out_ref[...] = (mean * inv_full).astype(out_ref.dtype)


def magnn_metapath_instance(inputs, num_heads, out_dim, *,
                            edges_per_block=512, node_block=512):
    """Forward of MAGNN_metapath_instance(rnn_type='average', use_minibatch=False).

    inputs = (g, features, topic, edge_metapath_text_indices, type_mask,
              edge_metapath_indices); only `features` and
              `edge_metapath_indices` participate in this branch.
    Returns eft of shape (E, num_heads, out_dim).
    """
    _g, features, _topic, _emti, _type_mask, edge_metapath_indices = inputs

    d = num_heads * out_dim
    features = features.reshape(-1, d)                        # features.view(-1, self.d)
    n_nodes = features.shape[0]
    itemsize = jnp.dtype(features.dtype).itemsize

    idx = edge_metapath_indices.astype(jnp.int32)
    n_edges, seq_len = idx.shape
    assert seq_len >= 2, "metapath length must be >= 2 for the 'average' branch"

    # --- node blocking (K-tiling of the one-hot matmul) ----------------------
    nb = max(8, min(_round_up(node_block, 8), _round_up(n_nodes, 8)))
    n_nodes_pad = _round_up(n_nodes, nb)
    if n_nodes_pad != n_nodes:
        # Zero rows; never indexed (all valid indices are < n_nodes).
        features = jnp.pad(features, ((0, n_nodes_pad - n_nodes), (0, 0)))

    # --- edge blocking --------------------------------------------------------
    eb = max(8, min(_round_up(edges_per_block, 8), _round_up(n_edges, 8)))
    if n_edges > 8:
        # >= 2 grid steps so the "parallel" axis can shard across v7x's 2 TCs
        # (harmless on single-core v5e/v6e).
        eb = max(8, min(eb, _round_up(pl.cdiv(n_edges, 2), 8)))
    e_pad = _round_up(n_edges, eb)
    if e_pad != n_edges:
        # Padded rows gather node 0 repeatedly; if that row is all-zero the
        # norm clamps at 1e-12 and yields 0 (no NaN). Pad rows are sliced off.
        idx = jnp.pad(idx, ((0, e_pad - n_edges), (0, 0)))

    # --- generation-aware VMEM budget -----------------------------------------
    try:
        vmem_cap = int(pltpu.get_tpu_info().vmem_capacity_bytes)
    except Exception:
        vmem_cap = 64 * 1024 * 1024        # v7x per-TC size: safe lower bound
    vmem_cap_budget = (vmem_cap * 3) // 4  # ~96 MiB on v5e/v6e, ~48 MiB on v7x

    d_lanes = _round_up(d, 128)
    feat_bytes = n_nodes_pad * d_lanes * itemsize              # single-buffered table
    idx_bytes = 2 * eb * 128 * 4                               # (Eb, L) lane-padded, 2x buffered
    out_bytes = 2 * eb * d_lanes * itemsize                    # output block, 2x buffered
    tmp_bytes = 3 * eb * nb * 4 + 4 * eb * d_lanes * 4         # counts/iota/cmp + acc/mean/sq temps
    vmem_need = feat_bytes + idx_bytes + out_bytes + tmp_bytes + (4 << 20)
    vmem_budget = int(min(max(vmem_need, 32 * 1024 * 1024), vmem_cap_budget))
    # TODO(synk): if feat_bytes alone exceeds the per-core VMEM budget, fall
    # back to a manual double-buffered HBM row-gather (pl.ANY + make_async_copy)
    # instead of a resident table; not needed at these shapes.

    kernel = functools.partial(_metapath_average_block_kernel,
                               num_heads=num_heads, out_dim=out_dim,
                               node_block=nb)

    def build(single_buffer_table):
        table_kwargs = (dict(pipeline_mode=pl.Buffered(1))
                        if single_buffer_table else {})
        return pl.pallas_call(
            kernel,
            out_shape=jax.ShapeDtypeStruct((e_pad, d), features.dtype),
            grid_spec=pltpu.PrefetchScalarGridSpec(
                num_scalar_prefetch=0,
                grid=(e_pad // eb,),
                in_specs=[
                    # Metapath index block for this set of edges.
                    pl.BlockSpec((eb, seq_len), lambda i: (i, 0)),
                    # Whole feature table, VMEM resident (constant block index);
                    # single-buffered so the constant block isn't held twice.
                    pl.BlockSpec((n_nodes_pad, d), lambda i: (0, 0),
                                 **table_kwargs),
                ],
                out_specs=pl.BlockSpec((eb, d), lambda i: (i, 0)),
            ),
            compiler_params=pltpu.CompilerParams(
                dimension_semantics=("parallel",),
                vmem_limit_bytes=vmem_budget),
        )

    try:
        out = build(True)(idx, features)
    except Exception:
        # pl.Buffered(1) not supported by this jax/libtpu combo: fall back to
        # the default (double-buffered) pipelining of the constant table block.
        out = build(False)(idx, features)

    return out[:n_edges].reshape(n_edges, num_heads, out_dim)


def _reference(features, idx, num_heads, out_dim):
    feat = features.reshape(-1, num_heads * out_dim).astype(jnp.float32)
    edata = feat[idx]                                   # (E, L, d)
    hidden = jnp.mean(edata[:, :-1, :], axis=1)         # (E, d)
    hidden = hidden.reshape(-1, num_heads, out_dim)     # (E, H, D)
    nrm = jnp.sqrt(jnp.sum(hidden * hidden, axis=1, keepdims=True))
    return hidden / jnp.maximum(nrm, 1e-12)


def _run_case(name, *, key, n_nodes, n_edges, seq_len, num_heads, out_dim,
              dtype, node_block=512, atol=1e-5, rtol=1e-5):
    k_feat, k_idx = jax.random.split(key)
    d = num_heads * out_dim
    features = jax.random.normal(k_feat, (n_nodes, d),
                                 dtype=jnp.float32).astype(dtype)
    edge_metapath_indices = jax.random.randint(
        k_idx, (n_edges, seq_len), 0, n_nodes, dtype=jnp.int32)

    # Unused-by-this-branch graph inputs (kept for forward-signature fidelity).
    inputs = (None, features, None,
              jnp.zeros((n_edges, seq_len), jnp.int32),
              jnp.zeros((n_nodes,), jnp.int32),
              edge_metapath_indices)

    eft = magnn_metapath_instance(inputs, num_heads, out_dim,
                                  node_block=node_block)
    eft = jax.block_until_ready(eft)
    assert eft.shape == (n_edges, num_heads, out_dim), name

    ref = _reference(features, edge_metapath_indices, num_heads, out_dim)
    ok = jnp.allclose(eft.astype(jnp.float32), ref, rtol=rtol, atol=atol)
    assert bool(ok), f"{name}: mismatch vs reference"


if __name__ == "__main__":
    key = jax.random.PRNGKey(0)
    k1, k2, k3 = jax.random.split(key, 3)

    # 1) Tiny f32: single node block, 2-step edge grid, d = 64.
    _run_case("small_f32", key=k1, n_nodes=12, n_edges=24, seq_len=4,
              num_heads=4, out_dim=16, dtype=jnp.float32)

    # 2) f32, two node blocks (statically unrolled K-tiling), d = 128.
    _run_case("f32_two_node_blocks", key=k2, n_nodes=1000, n_edges=40,
              seq_len=3, num_heads=2, out_dim=64, dtype=jnp.float32,
              node_block=512)

    # 3) bf16 table, 10 node blocks (fori_loop K-tiling path), d = 128.
    _run_case("bf16_ktiled", key=k3, n_nodes=1200, n_edges=96, seq_len=5,
              num_heads=8, out_dim=16, dtype=jnp.bfloat16, node_block=128,
              atol=2e-2, rtol=2e-2)

    print("KERNEL_OK")
</pallas_src>

<mosaic_0001>
module attributes {stable_mosaic.version = 11 : i64} {
  func.func @_metapath_average_block_kernel(%arg0: i32, %arg1: memref<16x4xi32, #tpu.memory_space<vmem>>, %arg2: memref<16x64xf32, #tpu.memory_space<vmem>>, %arg3: memref<16x64xf32, #tpu.memory_space<vmem>>) attributes {dimension_semantics = [#tpu.dimension_semantics<parallel>], iteration_bounds = array<i64: 2>, scalar_prefetch = 0 : i64, scratch_operands = 0 : i64, tpu.core_type = #tpu.core_type<tc>, window_params = [{transform_indices = @transform_0, window_bounds = array<i64: 16, 4>}, {pipeline_mode = #tpu.pipeline_mode<synchronous>, transform_indices = @transform_1, window_bounds = array<i64: 16, 64>}, {transform_indices = @transform_2, window_bounds = array<i64: 16, 64>}]} {
    %c0 = arith.constant 0 : index
    %c0_0 = arith.constant 0 : index
    %0 = vector.load %arg1[%c0, %c0_0] : memref<16x4xi32, #tpu.memory_space<vmem>>, vector<16x4xi32>
    %1 = tpu.iota {dimensions = array<i32: 1>} : vector<16x16xi32>
    %cst = arith.constant 0.000000e+00 : f32
    %2 = vector.broadcast %cst : f32 to vector<16x64xf32>
    %c0_i32 = arith.constant 0 : i32
    %3 = vector.broadcast %c0_i32 : i32 to vector<16x16xi32>
    %4 = arith.addi %1, %3 : vector<16x16xi32>
    %cst_1 = arith.constant 0.000000e+00 : f32
    %5 = vector.broadcast %cst_1 : f32 to vector<16x16xf32>
    %6 = vector.extract_strided_slice %0 {offsets = [0, 0], sizes = [16, 1], strides = [1, 1]} : vector<16x4xi32> to vector<16x1xi32>
    %7 = vector.broadcast %6 : vector<16x1xi32> to vector<16x16xi32>
    %8 = arith.cmpi eq, %7, %4 : vector<16x16xi32>
    %9 = arith.extui %8 : vector<16x16xi1> to vector<16x16xi32>
    %10 = arith.sitofp %9 : vector<16x16xi32> to vector<16x16xf32>
    %11 = arith.addf %5, %10 : vector<16x16xf32>
    %12 = vector.extract_strided_slice %0 {offsets = [0, 1], sizes = [16, 1], strides = [1, 1]} : vector<16x4xi32> to vector<16x1xi32>
    %13 = vector.broadcast %12 : vector<16x1xi32> to vector<16x16xi32>
    %14 = arith.cmpi eq, %13, %4 : vector<16x16xi32>
    %15 = arith.extui %14 : vector<16x16xi1> to vector<16x16xi32>
    %16 = arith.sitofp %15 : vector<16x16xi32> to vector<16x16xf32>
    %17 = arith.addf %11, %16 : vector<16x16xf32>
    %18 = vector.extract_strided_slice %0 {offsets = [0, 2], sizes = [16, 1], strides = [1, 1]} : vector<16x4xi32> to vector<16x1xi32>
    %19 = vector.broadcast %18 : vector<16x1xi32> to vector<16x16xi32>
    %20 = arith.cmpi eq, %19, %4 : vector<16x16xi32>
    %21 = arith.extui %20 : vector<16x16xi1> to vector<16x16xi32>
    %22 = arith.sitofp %21 : vector<16x16xi32> to vector<16x16xf32>
    %23 = arith.addf %17, %22 : vector<16x16xf32>
    %c0_2 = arith.constant 0 : index
    %c0_3 = arith.constant 0 : index
    %24 = vector.load %arg2[%c0_2, %c0_3] : memref<16x64xf32, #tpu.memory_space<vmem>>, vector<16x64xf32>
    %cst_4 = arith.constant dense<0.000000e+00> : vector<16x64xf32>
    %25 = tpu.matmul %23, %24, %cst_4 {dimension_numbers = #tpu.dot_dimension_numbers<[1], [0], [0], [1], [0, 0, 1, 1], [], []>} : vector<16x16xf32>, vector<16x64xf32>, vector<16x64xf32> -> vector<16x64xf32>
    %26 = arith.addf %2, %25 : vector<16x64xf32>
    %cst_5 = arith.constant 0.333333343 : f32
    %27 = vector.broadcast %cst_5 : f32 to vector<16x64xf32>
    %28 = arith.mulf %26, %27 : vector<16x64xf32>
    %29 = arith.mulf %28, %28 : vector<16x64xf32>
    %30 = vector.extract_strided_slice %29 {offsets = [0, 0], sizes = [16, 16], strides = [1, 1]} : vector<16x64xf32> to vector<16x16xf32>
    %31 = vector.extract_strided_slice %29 {offsets = [0, 16], sizes = [16, 16], strides = [1, 1]} : vector<16x64xf32> to vector<16x16xf32>
    %32 = arith.addf %30, %31 : vector<16x16xf32>
    %33 = vector.extract_strided_slice %29 {offsets = [0, 32], sizes = [16, 16], strides = [1, 1]} : vector<16x64xf32> to vector<16x16xf32>
    %34 = arith.addf %32, %33 : vector<16x16xf32>
    %35 = vector.extract_strided_slice %29 {offsets = [0, 48], sizes = [16, 16], strides = [1, 1]} : vector<16x64xf32> to vector<16x16xf32>
    %36 = arith.addf %34, %35 : vector<16x16xf32>
    %37 = math.sqrt %36 : vector<16x16xf32>
    %cst_6 = arith.constant 9.99999996E-13 : f32
    %38 = vector.broadcast %cst_6 : f32 to vector<16x16xf32>
    %39 = arith.maximumf %37, %38 : vector<16x16xf32>
    %cst_7 = arith.constant 1.000000e+00 : f32
    %40 = vector.broadcast %cst_7 : f32 to vector<16x16xf32>
    %41 = arith.divf %40, %39 : vector<16x16xf32>
    %42 = tpu.concatenate %41, %41, %41, %41 in 1 : vector<16x16xf32>, vector<16x16xf32>, vector<16x16xf32>, vector<16x16xf32> -> vector<16x64xf32>
    %43 = arith.mulf %28, %42 : vector<16x64xf32>
    %c0_8 = arith.constant 0 : index
    %c0_9 = arith.constant 0 : index
    %44 = vector.load %arg3[%c0_8, %c0_9] : memref<16x64xf32, #tpu.memory_space<vmem>>, vector<16x64xf32>
    tpu.vector_store %arg3[%c0_8, %c0_9], %43 {strides = array<i32>} : memref<16x64xf32, #tpu.memory_space<vmem>>, vector<16x64xf32>,
    return
  }
  func.func @transform_0(%arg0: i32) -> (i32, i32) {
    %c0_i32 = arith.constant 0 : i32
    %c0_i32_0 = arith.constant 0 : i32
    return %arg0, %c0_i32 : i32, i32
  }
  func.func @transform_1(%arg0: i32) -> (i32, i32) {
    %c0_i32 = arith.constant 0 : i32
    %c0_i32_0 = arith.constant 0 : i32
    %c0_i32_1 = arith.constant 0 : i32
    return %c0_i32, %c0_i32_0 : i32, i32
  }
  func.func @transform_2(%arg0: i32) -> (i32, i32) {
    %c0_i32 = arith.constant 0 : i32
    %c0_i32_0 = arith.constant 0 : i32
    return %arg0, %c0_i32 : i32, i32
  }
}

module attributes {stable_mosaic.version = 11 : i64} {
  func.func @_metapath_average_block_kernel(%arg0: i32, %arg1: memref<16x4xi32, #tpu.memory_space<vmem>>, %arg2: memref<16x64xf32, #tpu.memory_space<vmem>>, %arg3: memref<16x64xf32, #tpu.memory_space<vmem>>) attributes {dimension_semantics = [#tpu.dimension_semantics<parallel>], iteration_bounds = array<i64: 2>, scalar_prefetch = 0 : i64, scratch_operands = 0 : i64, tpu.core_type = #tpu.core_type<tc>, window_params = [{transform_indices = @transform_0, window_bounds = array<i64: 16, 4>}, {pipeline_mode = #tpu.pipeline_mode<synchronous>, transform_indices = @transform_1, window_bounds = array<i64: 16, 64>}, {transform_indices = @transform_2, window_bounds = array<i64: 16, 64>}]} {
    %c0 = arith.constant 0 : index
    %c0_0 = arith.constant 0 : index
    %0 = vector.load %arg1[%c0, %c0_0] : memref<16x4xi32, #tpu.memory_space<vmem>>, vector<16x4xi32>
    %1 = tpu.iota {dimensions = array<i32: 1>} : vector<16x16xi32>
    %cst = arith.constant 0.000000e+00 : f32
    %2 = vector.broadcast %cst : f32 to vector<16x64xf32>
    %c0_i32 = arith.constant 0 : i32
    %3 = vector.broadcast %c0_i32 : i32 to vector<16x16xi32>
    %4 = arith.addi %1, %3 : vector<16x16xi32>
    %cst_1 = arith.constant 0.000000e+00 : f32
    %5 = vector.broadcast %cst_1 : f32 to vector<16x16xf32>
    %6 = vector.extract_strided_slice %0 {offsets = [0, 0], sizes = [16, 1], strides = [1, 1]} : vector<16x4xi32> to vector<16x1xi32>
    %7 = vector.broadcast %6 : vector<16x1xi32> to vector<16x16xi32>
    %8 = arith.cmpi eq, %7, %4 : vector<16x16xi32>
    %9 = arith.extui %8 : vector<16x16xi1> to vector<16x16xi32>
    %10 = arith.sitofp %9 : vector<16x16xi32> to vector<16x16xf32>
    %11 = arith.addf %5, %10 : vector<16x16xf32>
    %12 = vector.extract_strided_slice %0 {offsets = [0, 1], sizes = [16, 1], strides = [1, 1]} : vector<16x4xi32> to vector<16x1xi32>
    %13 = vector.broadcast %12 : vector<16x1xi32> to vector<16x16xi32>
    %14 = arith.cmpi eq, %13, %4 : vector<16x16xi32>
    %15 = arith.extui %14 : vector<16x16xi1> to vector<16x16xi32>
    %16 = arith.sitofp %15 : vector<16x16xi32> to vector<16x16xf32>
    %17 = arith.addf %11, %16 : vector<16x16xf32>
    %18 = vector.extract_strided_slice %0 {offsets = [0, 2], sizes = [16, 1], strides = [1, 1]} : vector<16x4xi32> to vector<16x1xi32>
    %19 = vector.broadcast %18 : vector<16x1xi32> to vector<16x16xi32>
    %20 = arith.cmpi eq, %19, %4 : vector<16x16xi32>
    %21 = arith.extui %20 : vector<16x16xi1> to vector<16x16xi32>
    %22 = arith.sitofp %21 : vector<16x16xi32> to vector<16x16xf32>
    %23 = arith.addf %17, %22 : vector<16x16xf32>
    %c0_2 = arith.constant 0 : index
    %c0_3 = arith.constant 0 : index
    %24 = vector.load %arg2[%c0_2, %c0_3] : memref<16x64xf32, #tpu.memory_space<vmem>>, vector<16x64xf32>
    %cst_4 = arith.constant dense<0.000000e+00> : vector<16x64xf32>
    %25 = tpu.matmul %23, %24, %cst_4 {dimension_numbers = #tpu.dot_dimension_numbers<[1], [0], [0], [1], [0, 0, 1, 1], [], []>} : vector<16x16xf32>, vector<16x64xf32>, vector<16x64xf32> -> vector<16x64xf32>
    %26 = arith.addf %2, %25 : vector<16x64xf32>
    %cst_5 = arith.constant 0.333333343 : f32
    %27 = vector.broadcast %cst_5 : f32 to vector<16x64xf32>
    %28 = arith.mulf %26, %27 : vector<16x64xf32>
    %29 = arith.mulf %28, %28 : vector<16x64xf32>
    %30 = vector.extract_strided_slice %29 {offsets = [0, 0], sizes = [16, 16], strides = [1, 1]} : vector<16x64xf32> to vector<16x16xf32>
    %31 = vector.extract_strided_slice %29 {offsets = [0, 16], sizes = [16, 16], strides = [1, 1]} : vector<16x64xf32> to vector<16x16xf32>
    %32 = arith.addf %30, %31 : vector<16x16xf32>
    %33 = vector.extract_strided_slice %29 {offsets = [0, 32], sizes = [16, 16], strides = [1, 1]} : vector<16x64xf32> to vector<16x16xf32>
    %34 = arith.addf %32, %33 : vector<16x16xf32>
    %35 = vector.extract_strided_slice %29 {offsets = [0, 48], sizes = [16, 16], strides = [1, 1]} : vector<16x64xf32> to vector<16x16xf32>
    %36 = arith.addf %34, %35 : vector<16x16xf32>
    %37 = math.sqrt %36 : vector<16x16xf32>
    %cst_6 = arith.constant 9.99999996E-13 : f32
    %38 = vector.broadcast %cst_6 : f32 to vector<16x16xf32>
    %39 = arith.maximumf %37, %38 : vector<16x16xf32>
    %cst_7 = arith.constant 1.000000e+00 : f32
    %40 = vector.broadcast %cst_7 : f32 to vector<16x16xf32>
    %41 = arith.divf %40, %39 : vector<16x16xf32>
    %42 = tpu.concatenate %41, %41, %41, %41 in 1 : vector<16x16xf32>, vector<16x16xf32>, vector<16x16xf32>, vector<16x16xf32> -> vector<16x64xf32>
    %43 = arith.mulf %28, %42 : vector<16x64xf32>
    %c0_8 = arith.constant 0 : index
    %c0_9 = arith.constant 0 : index
    %44 = vector.load %arg3[%c0_8, %c0_9] : memref<16x64xf32, #tpu.memory_space<vmem>>, vector<16x64xf32>
    tpu.vector_store %arg3[%c0_8, %c0_9], %43 {strides = array<i32>} : memref<16x64xf32, #tpu.memory_space<vmem>>, vector<16x64xf32>,
    return
  }
  func.func @transform_0(%arg0: i32) -> (i32, i32) {
    %c0_i32 = arith.constant 0 : i32
    %c0_i32_0 = arith.constant 0 : i32
    return %arg0, %c0_i32 : i32, i32
  }
  func.func @transform_1(%arg0: i32) -> (i32, i32) {
    %c0_i32 = arith.constant 0 : i32
    %c0_i32_0 = arith.constant 0 : i32
    %c0_i32_1 = arith.constant 0 : i32
    return %c0_i32, %c0_i32_0 : i32, i32
  }
  func.func @transform_2(%arg0: i32) -> (i32, i32) {
    %c0_i32 = arith.constant 0 : i32
    %c0_i32_0 = arith.constant 0 : i32
    return %arg0, %c0_i32 : i32, i32
  }
}

</mosaic_0001>

<bundles_post_ra>
// kernel: tpu_custom_call.1
= control target key start
LH: loop header
LB: loop body
LE: loop exit
PB: predicated region body
PF: predicated region fallthrough
CT: control target
= control target key end

     0   :  { %7 = vsyncpa [#allocation3], 0  ;;  %s742_s0 = inlined_call_operand.vmem [shape: s32[32,4], index: 0, kind: input, shape index: {}]   ;;  %s743_s1 = inlined_call_operand.vmem [shape: f32[16,64], index: 1, kind: input, shape index: {}]   ;;  %s744_s2 = inlined_call_operand.hbm [shape: f32[32,64], index: 2, kind: output, shape index: {}]  }
   0x1   :  { %9 = vsyncpa [#allocation3 + $0x1], 0  ;;  %s621_s9 = smov 0   ;;  %s623_s10 = smov 0  }
   0x2   :  { %s625_s11 = smov 0   ;;  %s627_s12 = smov 0  }
   0x3 LB: > { %s642_s13 = sadd.s32 4294967295, %s591_s12   ;;  %s434_s14 = sadd.s32 4294967294, %s591_s12   ;;  %s591_s12 = sphi %s627_s12, %s750_s12   ;;  %s587_s11 = sphi %s625_s11, %s749_s11   ;;  %s583_s10 = sphi %s623_s10, %s748_s10   ;;  %s579_s9 = sphi %s621_s9, %s747_s9  }
   0x4   : > { %s646_s15 = sadd.s32 1, %s591_s12   ;;  %s69_s16 = sadd.s32 1, %s587_s11 }
   0x5   : > { %s66_s17 = ssub.s32 %s591_s12, %s646_s15  ;;  %p79_p0 = scmp.ne.s32.totalorder %s587_s11, %s583_s10 }
   0x6   : > { %p67_p1 = scmp.eq.s32.totalorder %s66_s17, 0  ;;  %p80_p2 = scmp.eq.s32.totalorder %s642_s13, 1 }
   0x7   : > { %p85_p3 = scmp.ne.s32.totalorder %s583_s10, %s579_s9  ;;  %p86_p4 = scmp.eq.s32.totalorder %s434_s14, 1 }
   0x8   : > { %s657_s18 = scalar_select %p67_p1, %s587_s11, %s69_s16  }
   0x9   : > { %p659_p5 = por %p80_p2, %p79_p0  ;;  %p663_p6 = por %p86_p4, %p85_p3 }
   0xa   : > { %p437_p7 = scmp.ge.s32.totalorder %s591_s12, 1  ;;  %p116_p8 = scmp.lt.s32.totalorder %s591_s12, 3 }
   0xc   : > { %p117_p9 = pnand %p437_p7, %p116_p8 }
   0xd   : > { %s439_s21 = sshll.u32 (!%p117_p9), %s642_s13, 1  ;;  %s597_s30 = smov (!%p117_p9), 112  }
   0xe   : > { %120 = sbr.rel (%p117_p9) target bundleno = 663 (0x297), region = 28  ;;  %p139_p10 = scmp.lt.s32.totalorder (!%p117_p9), %s439_s21, 3 }
   0xf   : > { %s598_s3 = smov (!%p117_p9), 96   ;;  %s599_s4 = smov (!%p117_p9), 80  }
  0x10   : > { %s600_s5 = smov (!%p117_p9), 16   ;;  %s601_s6 = smov (!%p117_p9), 32  }
  0x11   : > { %s602_s7 = smov (!%p117_p9), 48   ;;  %s135_s8 = sand.u32 (!%p117_p9), 1, %s583_s10  }
  0x12   : > { %s438_s14 = sshll.u32 (!%p117_p9), %s135_s8, 4  ;;  %s603_s26 = smov (!%p117_p9), [#allocation2]  }
  0x13   : > { %v593_v0 = vmov 0   ;;  %s752_s21 = smov (!%p139_p10, %s439_s21), 3  ;;  %v594_v3 = vmov 1   ;;  %v192_v4 = vld [vmem:[%s743_s1 + $0x8] sm:$0xff]  ;;  %v191_v5 = vld [vmem:[%s743_s1] sm:$0xff]  ;;  %v595_v6 = vmov 2   ;;  %v147_v7 = vlaneseq }
  0x14   : > { %519 = vset.pattern.permute.xlu1 %v593_v0  ;;  %517 = vset.pattern.permute.xlu0 %v593_v0  ;;  %s440_s22 = sshll.u32 %s752_s21, 3  ;;  %v596_v13 = vmov 0.0   ;;  %vm193_vm6 = vcmask 130048   ;;  %vm347_vm11 = vcmask 261120   ;;  %vm350_vm12 = vcmask 392192   ;;  %s137_s16 = scalar_lea.vmem [#allocation2], %s438_s14 }
  0x15   : > { %s142_s25 = scalar_lea.vmem %s742_s0, %s440_s22  ;;  %459 = vmatprep.subr.mxu0 %v192_v4  ;;  %v148_v10 = vand.u32 127, %v147_v7  ;;  %s372_s17 = sshll.u32 %s137_s16, 4  ;;  %vm355_vm13 = vcmask 523264   ;;  %s699_s17 = int_to_ptr.vmem [resolvable:$true] %s372_s17 }
  0x16   : > { %v146_v1 = vld [vmem:[%s142_s25 + $0x8] sm:$0xff]  ;;  %v145_v2 = vld [vmem:[%s142_s25] sm:$0xff]  ;;  %460 = vmatpush3.msra.mxu0 %v192_v4  ;;  %s454_s21 = sshll.u32 %s642_s13, 8  ;;  %s702_s13 = scalar_lea.sflag [#allocation3], %s135_s8 }
  0x17   : > { %153 = vperm.xlu1 %519, %v146_v1   ;;  %150 = vperm.xlu0 %517, %v145_v2   ;;  %s697_s24 = scalar_lea.hbm %s744_s2, %s454_s21  ;;  %s531_s25 = scalar_lea.vmem %s699_s17, 256 }
  0x18   : > { %461 = vmatprep.subr.mxu0 %v191_v5  ;;  %p532_p11 = scmp.ne.s32.totalorder %s699_s17, %s531_s25  ;;  %s535_s27 = sshll.u32 %s603_s26, 4  ;;  %s536_s27 = int_to_ptr.vmem [resolvable:$false] %s535_s27 }
  0x19   : > { %462 = vmatpush3.msra.mxu0 %v191_v5  ;;  %s537_s28 = scalar_lea.vmem %s536_s27, 512  ;;  %p538_p0 = scmp.lt.s32.totalorder %s699_s17, %s536_s27 }
  0x1a   : > { %p533_p12 = pnand %p532_p11, %p659_p5  ;;  %p539_p1 = scmp.lt.s32.totalorder %s537_s28, %s531_s25 }
  0x1b   : > { %520 = vset.pattern.permute.xlu1 %v594_v3  ;;  %518 = vset.pattern.permute.xlu0 %v594_v3 }
  0x1c   : > { %167 = vperm.xlu1 %520, %v146_v1   ;;  %164 = vperm.xlu0 %518, %v145_v2   ;;  %p534_p13 = pneg %p533_p12  ;;  %p540_p2 = por %p539_p1, %p538_p0 }
  0x1e   : > { %p541_p3 = pnand %p540_p2, %p534_p13 }
  0x20   : > { %521 = vset.pattern.permute.xlu1 %v595_v6  ;;  %522 = vset.pattern.permute.xlu0 %v595_v6 }
  0x21   : > { %178 = vperm.xlu1 %521, %v145_v2   ;;  %181 = vperm.xlu0 %522, %v146_v1  }
  0x92   : > { %v154_v8 = vpop.permute.xlu1 %153  ;;  %v151_v9 = vpop.permute.xlu0 %150 }
  0x93   : > { %vm156_vm2 = vcmp.eq.s32.totalorder %v154_v8, %v148_v10  ;;  %vm155_vm3 = vcmp.eq.s32.totalorder %v151_v9, %v148_v10 }
  0x94   : > { %v442_v16 = vsel %vm156_vm2, 1.0, %v596_v13  ;;  %v441_v17 = vsel %vm155_vm3, 1.0, %v596_v13 }
  0x97   : > { %v168_v11 = vpop.permute.xlu1 %167  ;;  %v165_v12 = vpop.permute.xlu0 %164 }
  0x98   : > { %vm170_vm0 = vcmp.eq.s32.totalorder %v168_v11, %v148_v10  ;;  %vm169_vm1 = vcmp.eq.s32.totalorder %v165_v12, %v148_v10 }
  0x99   : > { %v444_v14 = vsel %vm170_vm0, 1.0, %v596_v13  ;;  %v443_v15 = vsel %vm169_vm1, 1.0, %v596_v13 }
  0x9a   : > { %v176_v20 = vadd.f32 %v444_v14, %v442_v16  ;;  %v175_v21 = vadd.f32 %v443_v15, %v441_v17 }
  0x9c   : > { %v179_v18 = vpop.permute.xlu1 %178  ;;  %v182_v19 = vpop.permute.xlu0 %181 }
  0x9d   : > { %vm183_vm4 = vcmp.eq.s32.totalorder %v179_v18, %v148_v10  ;;  %vm184_vm5 = vcmp.eq.s32.totalorder %v182_v19, %v148_v10 }
  0x9e   : > { %v445_v22 = vsel %vm183_vm4, 1.0, %v596_v13  ;;  %v446_v23 = vsel %vm184_vm5, 1.0, %v596_v13 }
  0x9f   : > { %v190_v24 = vadd.f32 %v446_v23, %v176_v20  ;;  %v189_v25 = vadd.f32 %v445_v22, %v175_v21 }
  0xa1   : > { %463 = vmatprep.mubr.msk.f32.mxu0 %vm193_vm6, %v189_v25 }
  0xa2   : > { %464 = vmatmul.mubr.msk.f32.vlgmr.msra.gmra.mxu0 %vm193_vm6, %v190_v24 }
 0x162   : > { %v465_v26 = vpop.f32.mrf.mxu0 }
 0x163   : > { %v681_v27 = vmul.f32 0.33333334, %v465_v26 }
 0x164   : > { %v266_v28 = vpop.f32.mrf.mxu0 }
 0x165   : > { %v278_v29 = vmul.f32 %v681_v27, %v681_v27  ;;  %v685_v30 = vmul.f32 0.33333334, %v266_v28 }
 0x167   : > { %v277_v31 = vmul.f32 %v685_v30, %v685_v30  ;;  %283 = vrot.lane.b32.xlu1 %v278_v29, %s597_s30 }
 0x169   : > { %289 = vrot.lane.b32.xlu0 %v277_v31, %s598_s3 }
 0x16b   : > { %291 = vrot.lane.b32.xlu1 %v278_v29, %s598_s3 }
 0x16d   : > { %297 = vrot.lane.b32.xlu0 %v277_v31, %s599_s4 }
 0x16f   : > { %281 = vrot.lane.b32.xlu1 %v277_v31, %s597_s30 }
 0x173   : > { %299 = vrot.lane.b32.xlu1 %v278_v29, %s599_s4 }
 0x1d9   : > { %v284_v32 = vpop.permute.xlu1 %283 }
 0x1da   : > { %v288_v36 = vadd.f32 %v284_v32, %v278_v29 }
 0x1db   : > { %v290_v34 = vpop.permute.xlu0 %289 }
 0x1dd   : > { %v292_v33 = vpop.permute.xlu1 %291 }
 0x1de   : > { %v296_v38 = vadd.f32 %v292_v33, %v288_v36 }
 0x1df   : > { %v298_v40 = vpop.permute.xlu0 %297 }
 0x1e1   : > { %v282_v35 = vpop.permute.xlu1 %281 }
 0x1e2   : > { %v287_v37 = vadd.f32 %v282_v35, %v277_v31 }
 0x1e4   : > { %v295_v39 = vadd.f32 %v290_v34, %v287_v37 }
 0x1e5   : > { %v300_v41 = vpop.permute.xlu1 %299 }
 0x1e6   : > { %v303_v42 = vadd.f32 %v298_v40, %v295_v39  ;;  %v304_v43 = vadd.f32 %v300_v41, %v296_v38 }
 0x1e8   : > { %523 = vrsqrt.f32 %v303_v42  ;;  %vm307_vm7 = vcmp.eq.f32.partialorder %v303_v42, inf  ;;  %v310_v47 = vand.u32 2147483648, %v303_v42  ;;  %vm309_vm8 = vcmp.eq.f32.partialorder %v303_v42, 0.0 }
 0x1e9   : > { %525 = vrsqrt.f32 %v304_v43  ;;  %vm314_vm9 = vcmp.eq.f32.partialorder %v304_v43, inf  ;;  %v317_v50 = vand.u32 2147483648, %v304_v43  ;;  %vm316_vm10 = vcmp.eq.f32.partialorder %v304_v43, 0.0 }
 0x1f5   : > { %v524_v44 = vpop.eup %523 }
 0x1f6   : > { %v526_v45 = vpop.eup %525  ;;  %v306_v46 = vmul.f32 %v524_v44, %v303_v42 }
 0x1f7   : > { %v313_v48 = vmul.f32 %v526_v45, %v304_v43 }
 0x1f8   : > { %v308_v49 = vsel %vm307_vm7, %v303_v42, %v306_v46 }
 0x1f9   : > { %v311_v51 = vsel %vm309_vm8, %v310_v47, %v308_v49  ;;  %v315_v52 = vsel %vm314_vm9, %v304_v43, %v313_v48 }
 0x1fa   : > { %v319_v53 = vmax.f32 %v311_v51, 1e-12  ;;  %v318_v54 = vsel %vm316_vm10, %v317_v50, %v315_v52 }
 0x1fb   : > { %v320_v55 = vmax.f32 %v318_v54, 1e-12 }
 0x1fc   : > { %527 = vrcp.f32 %v319_v53 }
 0x1fd   : > { %529 = vrcp.f32 %v320_v55 }
 0x209   : > { %v528_v56 = vpop.eup %527 }
 0x20a   : > { %v530_v57 = vpop.eup %529  ;;  %327 = vrot.lane.b32.xlu0 %v528_v56, %s600_s5 }
 0x20b   : > { %329 = vrot.lane.b32.xlu1 %v530_v57, %s600_s5 }
 0x20e   : > { %333 = vrot.lane.b32.xlu0 %v528_v56, %s601_s6 }
 0x20f   : > { %335 = vrot.lane.b32.xlu1 %v530_v57, %s601_s6 }
 0x212   : > { %339 = vrot.lane.b32.xlu0 %v528_v56, %s602_s7 }
 0x213   : > { %341 = vrot.lane.b32.xlu1 %v530_v57, %s602_s7 }
 0x27c   : > { %v328_v58 = vpop.permute.xlu0 %327 }
 0x27d   : > { %v330_v59 = vpop.permute.xlu1 %329  ;;  %v345_v62 = vsel %vm193_vm6, %v528_v56, %v328_v58 }
 0x27e   : > { %v346_v63 = vsel %vm193_vm6, %v530_v57, %v330_v59 }
 0x280   : > { %v334_v60 = vpop.permute.xlu0 %333 }
 0x281   : > { %v336_v61 = vpop.permute.xlu1 %335  ;;  %v348_v0 = vsel %vm347_vm11, %v345_v62, %v334_v60 }
 0x282   : > { %v349_v2 = vsel %vm347_vm11, %v346_v63, %v336_v61 }
 0x284   : > { %v340_v1 = vpop.permute.xlu0 %339 }
 0x285   : > { %v351_v3 = vsel %vm350_vm12, %v348_v0, %v340_v1  ;;  %v342_v4 = vpop.permute.xlu1 %341 }
 0x286   : > { %v353_v5 = vmul.f32 %v351_v3, %v685_v30  ;;  %v352_v6 = vsel %vm350_vm12, %v349_v2, %v342_v4 }
 0x287   : > { %v354_v7 = vmul.f32 %v352_v6, %v681_v27 }
 0x288   : > { %356 = vst.msk [vmem:[%s137_s16] sm:$0xff] %vm355_vm13, %v353_v5 }
 0x289   : > { %357 = vst.msk [vmem:[%s137_s16 + $0x8] sm:$0xff] %vm355_vm13, %v354_v7 }
 0x28a   : > { %544 = shalt.err (!%p541_p3)
}
 0x28b   : > { %s545_s29 = scalar_lea.hbm %s697_s24, 256  ;;  %s549_s4 = scalar_lea.hbm %s744_s2, 512 }
 0x28c   : > { %p546_p4 = scmp.ne.s32.totalorder %s697_s24, %s545_s29  ;;  %p550_p9 = scmp.lt.s32.totalorder %s697_s24, %s744_s2 }
 0x28d   : > { %p551_p10 = scmp.lt.s32.totalorder %s549_s4, %s545_s29 }
 0x28e   : > { %p547_p7 = pnand %p546_p4, %p659_p5 }
 0x28f   : > { %p552_p11 = por %p551_p10, %p550_p9 }
 0x290   : > { %p548_p8 = pneg %p547_p7 }
 0x292   : > { %p553_p12 = pnand %p552_p11, %p548_p8 }
 0x294   : > { %556 = shalt.err (!%p553_p12)
}
 0x295   : > { %s604_s7 = smov 128   ;;  %s605_s8 = smov 8  }
 0x296   : > { %466 = dma.vmem_to_hbm [thread:$0]  (%p659_p5), %s699_s17, 256, %s697_s24, %s702_s13, %s604_s7, %s604_s7, %s605_s8  }
 0x297 PF: > { %p472_p13 = scmp.ge.s32.totalorder %s591_s12, 2  ;;  %s387_s14 = sand.u32 1, %s579_s9  }
 0x298   : > { %s388_s16 = scalar_lea.sflag [#allocation3], %s387_s14 }
 0x299   : > { %p469_p0 = pnand %p472_p13, %p663_p6 }
 0x29b   : > { %p470_p1 = pneg %p469_p0 }
 0x29d   : > { %574 = dma.done.wait (%p470_p1), %s388_s16, 256  }
 0x29e   : > { %576 = vsyncadd (%p470_p1), %s388_s16, 4294967040  ;;  %p12_p2 = scmp.ge.s32.totalorder %s646_s15, 4   ;;  %s747_s9 = smov %s583_s10 }
 0x29f   : > { %s748_s10 = smov %s587_s11  ;;  %s749_s11 = smov %s657_s18 }
 0x2a0   : > { %s750_s12 = smov %s646_s15  ;;  %14 = sbr.rel (!%p12_p2) target bundleno = 3 (0x3), region = 63 }
 0x2a5   :  { %393 = vsyncpa [#allocation3], 1 }
 0x2a6   :  { %395 = vsyncpa [#allocation3 + $0x1], 1 }

// kernel: tpu_custom_call.1
= control target key start
LH: loop header
LB: loop body
LE: loop exit
PB: predicated region body
PF: predicated region fallthrough
CT: control target
= control target key end

     0   :  { %7 = vsyncpa [#allocation3], 0  ;;  %s742_s0 = inlined_call_operand.vmem [shape: s32[32,4], index: 0, kind: input, shape index: {}]   ;;  %s743_s1 = inlined_call_operand.vmem [shape: f32[16,64], index: 1, kind: input, shape index: {}]   ;;  %s744_s2 = inlined_call_operand.hbm [shape: f32[32,64], index: 2, kind: output, shape index: {}]  }
   0x1   :  { %9 = vsyncpa [#allocation3 + $0x1], 0  ;;  %s621_s9 = smov 0   ;;  %s623_s10 = smov 0  }
   0x2   :  { %s625_s11 = smov 0   ;;  %s627_s12 = smov 0  }
   0x3 LB: > { %s642_s13 = sadd.s32 4294967295, %s591_s12   ;;  %s434_s14 = sadd.s32 4294967294, %s591_s12   ;;  %s591_s12 = sphi %s627_s12, %s750_s12   ;;  %s587_s11 = sphi %s625_s11, %s749_s11   ;;  %s583_s10 = sphi %s623_s10, %s748_s10   ;;  %s579_s9 = sphi %s621_s9, %s747_s9  }
   0x4   : > { %s646_s15 = sadd.s32 1, %s591_s12   ;;  %s69_s16 = sadd.s32 1, %s587_s11 }
   0x5   : > { %s66_s17 = ssub.s32 %s591_s12, %s646_s15  ;;  %p79_p0 = scmp.ne.s32.totalorder %s587_s11, %s583_s10 }
   0x6   : > { %p67_p1 = scmp.eq.s32.totalorder %s66_s17, 0  ;;  %p80_p2 = scmp.eq.s32.totalorder %s642_s13, 1 }
   0x7   : > { %p85_p3 = scmp.ne.s32.totalorder %s583_s10, %s579_s9  ;;  %p86_p4 = scmp.eq.s32.totalorder %s434_s14, 1 }
   0x8   : > { %s657_s18 = scalar_select %p67_p1, %s587_s11, %s69_s16  }
   0x9   : > { %p659_p5 = por %p80_p2, %p79_p0  ;;  %p663_p6 = por %p86_p4, %p85_p3 }
   0xa   : > { %p437_p7 = scmp.ge.s32.totalorder %s591_s12, 1  ;;  %p116_p8 = scmp.lt.s32.totalorder %s591_s12, 3 }
   0xc   : > { %p117_p9 = pnand %p437_p7, %p116_p8 }
   0xd   : > { %s439_s21 = sshll.u32 (!%p117_p9), %s642_s13, 1  ;;  %s597_s30 = smov (!%p117_p9), 112  }
   0xe   : > { %120 = sbr.rel (%p117_p9) target bundleno = 663 (0x297), region = 28  ;;  %p139_p10 = scmp.lt.s32.totalorder (!%p117_p9), %s439_s21, 3 }
   0xf   : > { %s598_s3 = smov (!%p117_p9), 96   ;;  %s599_s4 = smov (!%p117_p9), 80  }
  0x10   : > { %s600_s5 = smov (!%p117_p9), 16   ;;  %s601_s6 = smov (!%p117_p9), 32  }
  0x11   : > { %s602_s7 = smov (!%p117_p9), 48   ;;  %s135_s8 = sand.u32 (!%p117_p9), 1, %s583_s10  }
  0x12   : > { %s438_s14 = sshll.u32 (!%p117_p9), %s135_s8, 4  ;;  %s603_s26 = smov (!%p117_p9), [#allocation2]  }
  0x13   : > { %v593_v0 = vmov 0   ;;  %s752_s21 = smov (!%p139_p10, %s439_s21), 3  ;;  %v594_v3 = vmov 1   ;;  %v192_v4 = vld [vmem:[%s743_s1 + $0x8] sm:$0xff]  ;;  %v191_v5 = vld [vmem:[%s743_s1] sm:$0xff]  ;;  %v595_v6 = vmov 2   ;;  %v147_v7 = vlaneseq }
  0x14   : > { %519 = vset.pattern.permute.xlu1 %v593_v0  ;;  %517 = vset.pattern.permute.xlu0 %v593_v0  ;;  %s440_s22 = sshll.u32 %s752_s21, 3  ;;  %v596_v13 = vmov 0.0   ;;  %vm193_vm6 = vcmask 130048   ;;  %vm347_vm11 = vcmask 261120   ;;  %vm350_vm12 = vcmask 392192   ;;  %s137_s16 = scalar_lea.vmem [#allocation2], %s438_s14 }
  0x15   : > { %s142_s25 = scalar_lea.vmem %s742_s0, %s440_s22  ;;  %459 = vmatprep.subr.mxu0 %v192_v4  ;;  %v148_v10 = vand.u32 127, %v147_v7  ;;  %s372_s17 = sshll.u32 %s137_s16, 4  ;;  %vm355_vm13 = vcmask 523264   ;;  %s699_s17 = int_to_ptr.vmem [resolvable:$true] %s372_s17 }
  0x16   : > { %v146_v1 = vld [vmem:[%s142_s25 + $0x8] sm:$0xff]  ;;  %v145_v2 = vld [vmem:[%s142_s25] sm:$0xff]  ;;  %460 = vmatpush3.msra.mxu0 %v192_v4  ;;  %s454_s21 = sshll.u32 %s642_s13, 8  ;;  %s702_s13 = scalar_lea.sflag [#allocation3], %s135_s8 }
  0x17   : > { %153 = vperm.xlu1 %519, %v146_v1   ;;  %150 = vperm.xlu0 %517, %v145_v2   ;;  %s697_s24 = scalar_lea.hbm %s744_s2, %s454_s21  ;;  %s531_s25 = scalar_lea.vmem %s699_s17, 256 }
  0x18   : > { %461 = vmatprep.subr.mxu0 %v191_v5  ;;  %p532_p11 = scmp.ne.s32.totalorder %s699_s17, %s531_s25  ;;  %s535_s27 = sshll.u32 %s603_s26, 4  ;;  %s536_s27 = int_to_ptr.vmem [resolvable:$false] %s535_s27 }
  0x19   : > { %462 = vmatpush3.msra.mxu0 %v191_v5  ;;  %s537_s28 = scalar_lea.vmem %s536_s27, 512  ;;  %p538_p0 = scmp.lt.s32.totalorder %s699_s17, %s536_s27 }
  0x1a   : > { %p533_p12 = pnand %p532_p11, %p659_p5  ;;  %p539_p1 = scmp.lt.s32.totalorder %s537_s28, %s531_s25 }
  0x1b   : > { %520 = vset.pattern.permute.xlu1 %v594_v3  ;;  %518 = vset.pattern.permute.xlu0 %v594_v3 }
  0x1c   : > { %167 = vperm.xlu1 %520, %v146_v1   ;;  %164 = vperm.xlu0 %518, %v145_v2   ;;  %p534_p13 = pneg %p533_p12  ;;  %p540_p2 = por %p539_p1, %p538_p0 }
  0x1e   : > { %p541_p3 = pnand %p540_p2, %p534_p13 }
  0x20   : > { %521 = vset.pattern.permute.xlu1 %v595_v6  ;;  %522 = vset.pattern.permute.xlu0 %v595_v6 }
  0x21   : > { %178 = vperm.xlu1 %521, %v145_v2   ;;  %181 = vperm.xlu0 %522, %v146_v1  }
  0x92   : > { %v154_v8 = vpop.permute.xlu1 %153  ;;  %v151_v9 = vpop.permute.xlu0 %150 }
  0x93   : > { %vm156_vm2 = vcmp.eq.s32.totalorder %v154_v8, %v148_v10  ;;  %vm155_vm3 = vcmp.eq.s32.totalorder %v151_v9, %v148_v10 }
  0x94   : > { %v442_v16 = vsel %vm156_vm2, 1.0, %v596_v13  ;;  %v441_v17 = vsel %vm155_vm3, 1.0, %v596_v13 }
  0x97   : > { %v168_v11 = vpop.permute.xlu1 %167  ;;  %v165_v12 = vpop.permute.xlu0 %164 }
  0x98   : > { %vm170_vm0 = vcmp.eq.s32.totalorder %v168_v11, %v148_v10  ;;  %vm169_vm1 = vcmp.eq.s32.totalorder %v165_v12, %v148_v10 }
  0x99   : > { %v444_v14 = vsel %vm170_vm0, 1.0, %v596_v13  ;;  %v443_v15 = vsel %vm169_vm1, 1.0, %v596_v13 }
  0x9a   : > { %v176_v20 = vadd.f32 %v444_v14, %v442_v16  ;;  %v175_v21 = vadd.f32 %v443_v15, %v441_v17 }
  0x9c   : > { %v179_v18 = vpop.permute.xlu1 %178  ;;  %v182_v19 = vpop.permute.xlu0 %181 }
  0x9d   : > { %vm183_vm4 = vcmp.eq.s32.totalorder %v179_v18, %v148_v10  ;;  %vm184_vm5 = vcmp.eq.s32.totalorder %v182_v19, %v148_v10 }
  0x9e   : > { %v445_v22 = vsel %vm183_vm4, 1.0, %v596_v13  ;;  %v446_v23 = vsel %vm184_vm5, 1.0, %v596_v13 }
  0x9f   : > { %v190_v24 = vadd.f32 %v446_v23, %v176_v20  ;;  %v189_v25 = vadd.f32 %v445_v22, %v175_v21 }
  0xa1   : > { %463 = vmatprep.mubr.msk.f32.mxu0 %vm193_vm6, %v189_v25 }
  0xa2   : > { %464 = vmatmul.mubr.msk.f32.vlgmr.msra.gmra.mxu0 %vm193_vm6, %v190_v24 }
 0x162   : > { %v465_v26 = vpop.f32.mrf.mxu0 }
 0x163   : > { %v681_v27 = vmul.f32 0.33333334, %v465_v26 }
 0x164   : > { %v266_v28 = vpop.f32.mrf.mxu0 }
 0x165   : > { %v278_v29 = vmul.f32 %v681_v27, %v681_v27  ;;  %v685_v30 = vmul.f32 0.33333334, %v266_v28 }
 0x167   : > { %v277_v31 = vmul.f32 %v685_v30, %v685_v30  ;;  %283 = vrot.lane.b32.xlu1 %v278_v29, %s597_s30 }
 0x169   : > { %289 = vrot.lane.b32.xlu0 %v277_v31, %s598_s3 }
 0x16b   : > { %291 = vrot.lane.b32.xlu1 %v278_v29, %s598_s3 }
 0x16d   : > { %297 = vrot.lane.b32.xlu0 %v277_v31, %s599_s4 }
 0x16f   : > { %281 = vrot.lane.b32.xlu1 %v277_v31, %s597_s30 }
 0x173   : > { %299 = vrot.lane.b32.xlu1 %v278_v29, %s599_s4 }
 0x1d9   : > { %v284_v32 = vpop.permute.xlu1 %283 }
 0x1da   : > { %v288_v36 = vadd.f32 %v284_v32, %v278_v29 }
 0x1db   : > { %v290_v34 = vpop.permute.xlu0 %289 }
 0x1dd   : > { %v292_v33 = vpop.permute.xlu1 %291 }
 0x1de   : > { %v296_v38 = vadd.f32 %v292_v33, %v288_v36 }
 0x1df   : > { %v298_v40 = vpop.permute.xlu0 %297 }
 0x1e1   : > { %v282_v35 = vpop.permute.xlu1 %281 }
 0x1e2   : > { %v287_v37 = vadd.f32 %v282_v35, %v277_v31 }
 0x1e4   : > { %v295_v39 = vadd.f32 %v290_v34, %v287_v37 }
 0x1e5   : > { %v300_v41 = vpop.permute.xlu1 %299 }
 0x1e6   : > { %v303_v42 = vadd.f32 %v298_v40, %v295_v39  ;;  %v304_v43 = vadd.f32 %v300_v41, %v296_v38 }
 0x1e8   : > { %523 = vrsqrt.f32 %v303_v42  ;;  %vm307_vm7 = vcmp.eq.f32.partialorder %v303_v42, inf  ;;  %v310_v47 = vand.u32 2147483648, %v303_v42  ;;  %vm309_vm8 = vcmp.eq.f32.partialorder %v303_v42, 0.0 }
 0x1e9   : > { %525 = vrsqrt.f32 %v304_v43  ;;  %vm314_vm9 = vcmp.eq.f32.partialorder %v304_v43, inf  ;;  %v317_v50 = vand.u32 2147483648, %v304_v43  ;;  %vm316_vm10 = vcmp.eq.f32.partialorder %v304_v43, 0.0 }
 0x1f5   : > { %v524_v44 = vpop.eup %523 }
 0x1f6   : > { %v526_v45 = vpop.eup %525  ;;  %v306_v46 = vmul.f32 %v524_v44, %v303_v42 }
 0x1f7   : > { %v313_v48 = vmul.f32 %v526_v45, %v304_v43 }
 0x1f8   : > { %v308_v49 = vsel %vm307_vm7, %v303_v42, %v306_v46 }
 0x1f9   : > { %v311_v51 = vsel %vm309_vm8, %v310_v47, %v308_v49  ;;  %v315_v52 = vsel %vm314_vm9, %v304_v43, %v313_v48 }
 0x1fa   : > { %v319_v53 = vmax.f32 %v311_v51, 1e-12  ;;  %v318_v54 = vsel %vm316_vm10, %v317_v50, %v315_v52 }
 0x1fb   : > { %v320_v55 = vmax.f32 %v318_v54, 1e-12 }
 0x1fc   : > { %527 = vrcp.f32 %v319_v53 }
 0x1fd   : > { %529 = vrcp.f32 %v320_v55 }
 0x209   : > { %v528_v56 = vpop.eup %527 }
 0x20a   : > { %v530_v57 = vpop.eup %529  ;;  %327 = vrot.lane.b32.xlu0 %v528_v56, %s600_s5 }
 0x20b   : > { %329 = vrot.lane.b32.xlu1 %v530_v57, %s600_s5 }
 0x20e   : > { %333 = vrot.lane.b32.xlu0 %v528_v56, %s601_s6 }
 0x20f   : > { %335 = vrot.lane.b32.xlu1 %v530_v57, %s601_s6 }
 0x212   : > { %339 = vrot.lane.b32.xlu0 %v528_v56, %s602_s7 }
 0x213   : > { %341 = vrot.lane.b32.xlu1 %v530_v57, %s602_s7 }
 0x27c   : > { %v328_v58 = vpop.permute.xlu0 %327 }
 0x27d   : > { %v330_v59 = vpop.permute.xlu1 %329  ;;  %v345_v62 = vsel %vm193_vm6, %v528_v56, %v328_v58 }
 0x27e   : > { %v346_v63 = vsel %vm193_vm6, %v530_v57, %v330_v59 }
 0x280   : > { %v334_v60 = vpop.permute.xlu0 %333 }
 0x281   : > { %v336_v61 = vpop.permute.xlu1 %335  ;;  %v348_v0 = vsel %vm347_vm11, %v345_v62, %v334_v60 }
 0x282   : > { %v349_v2 = vsel %vm347_vm11, %v346_v63, %v336_v61 }
 0x284   : > { %v340_v1 = vpop.permute.xlu0 %339 }
 0x285   : > { %v351_v3 = vsel %vm350_vm12, %v348_v0, %v340_v1  ;;  %v342_v4 = vpop.permute.xlu1 %341 }
 0x286   : > { %v353_v5 = vmul.f32 %v351_v3, %v685_v30  ;;  %v352_v6 = vsel %vm350_vm12, %v349_v2, %v342_v4 }
 0x287   : > { %v354_v7 = vmul.f32 %v352_v6, %v681_v27 }
 0x288   : > { %356 = vst.msk [vmem:[%s137_s16] sm:$0xff] %vm355_vm13, %v353_v5 }
 0x289   : > { %357 = vst.msk [vmem:[%s137_s16 + $0x8] sm:$0xff] %vm355_vm13, %v354_v7 }
 0x28a   : > { %544 = shalt.err (!%p541_p3)
}
 0x28b   : > { %s545_s29 = scalar_lea.hbm %s697_s24, 256  ;;  %s549_s4 = scalar_lea.hbm %s744_s2, 512 }
 0x28c   : > { %p546_p4 = scmp.ne.s32.totalorder %s697_s24, %s545_s29  ;;  %p550_p9 = scmp.lt.s32.totalorder %s697_s24, %s744_s2 }
 0x28d   : > { %p551_p10 = scmp.lt.s32.totalorder %s549_s4, %s545_s29 }
 0x28e   : > { %p547_p7 = pnand %p546_p4, %p659_p5 }
 0x28f   : > { %p552_p11 = por %p551_p10, %p550_p9 }
 0x290   : > { %p548_p8 = pneg %p547_p7 }
 0x292   : > { %p553_p12 = pnand %p552_p11, %p548_p8 }
 0x294   : > { %556 = shalt.err (!%p553_p12)
}
 0x295   : > { %s604_s7 = smov 128   ;;  %s605_s8 = smov 8  }
 0x296   : > { %466 = dma.vmem_to_hbm [thread:$0]  (%p659_p5), %s699_s17, 256, %s697_s24, %s702_s13, %s604_s7, %s604_s7, %s605_s8  }
 0x297 PF: > { %p472_p13 = scmp.ge.s32.totalorder %s591_s12, 2  ;;  %s387_s14 = sand.u32 1, %s579_s9  }
 0x298   : > { %s388_s16 = scalar_lea.sflag [#allocation3], %s387_s14 }
 0x299   : > { %p469_p0 = pnand %p472_p13, %p663_p6 }
 0x29b   : > { %p470_p1 = pneg %p469_p0 }
 0x29d   : > { %574 = dma.done.wait (%p470_p1), %s388_s16, 256  }
 0x29e   : > { %576 = vsyncadd (%p470_p1), %s388_s16, 4294967040  ;;  %p12_p2 = scmp.ge.s32.totalorder %s646_s15, 4   ;;  %s747_s9 = smov %s583_s10 }
 0x29f   : > { %s748_s10 = smov %s587_s11  ;;  %s749_s11 = smov %s657_s18 }
 0x2a0   : > { %s750_s12 = smov %s646_s15  ;;  %14 = sbr.rel (!%p12_p2) target bundleno = 3 (0x3), region = 63 }
 0x2a5   :  { %393 = vsyncpa [#allocation3], 1 }
 0x2a6   :  { %395 = vsyncpa [#allocation3 + $0x1], 1 }

</bundles_post_ra>
